<compile_context>
chip_gen: v5e
topology: v5e:2x2
jax: 0.10.0
libtpu: 0.0.40
codegen_flags: <defaults>
</compile_context>

<pallas_src>
import jax
import jax.numpy as jnp
from jax.experimental import pallas as pl
from jax.experimental.pallas import tpu as pltpu

_HI = jax.lax.Precision.HIGHEST


# ---------------------------------------------------------------------------
# Pallas kernel: fused  (x+res) -> local att -> (+ precomputed global) -> gate
# Blocks are (1, C, T): channels on sublanes, spatial pixels on lanes.
# ---------------------------------------------------------------------------
def _aff_local_kernel(x_ref, r_ref, xg_ref,
                      w1_ref, b1_ref, w2_ref, b2_ref,
                      o_ref):
    x = x_ref[0].astype(jnp.float32)       # (C, T)
    res = r_ref[0].astype(jnp.float32)     # (C, T)
    xa = x + res

    # ---- local attention branch: per-pixel 1x1 convs (BN folded) ----
    h = jnp.dot(w1_ref[...], xa, precision=_HI,
                preferred_element_type=jnp.float32) + b1_ref[...]     # (Ci, T)
    h = jnp.maximum(h, 0.0)
    xl = jnp.dot(w2_ref[...], h, precision=_HI,
                 preferred_element_type=jnp.float32) + b2_ref[...]    # (C, T)

    # ---- add precomputed global-branch logits (C, 1), gate, output ----
    wei = jax.nn.sigmoid(xl + xg_ref[0])                              # (C, T)
    o_ref[0] = (2.0 * (res + wei * (x - res))).astype(o_ref.dtype)


# ---------------------------------------------------------------------------
# Spatial tiling choice (lane axis). Block == full dim is always legal; for
# large images pad the spatial axis to a lane multiple and tile it.
# ---------------------------------------------------------------------------
_MAX_TILE_LANES = 4096   # f32, C=64: 3 streams * 2 bufs * 64 * 4096 * 4B = 6 MiB


def _pick_hw_tiling(hw, max_lanes=_MAX_TILE_LANES):
    if hw <= max_lanes:
        return hw, hw                            # single tile (== full dim)
    hw_pad = -(-hw // 128) * 128                 # pad spatial axis to lane multiple
    for t in (4096, 2048, 1024, 512, 256, 128):
        if t <= max_lanes and hw_pad % t == 0:
            return t, hw_pad
    return 128, hw_pad                           # unreachable (128 always divides)


def _aff_pallas(x_ncl, r_ncl, xg_ncl, lw1, lb1, lw2, lb2):
    N, C, HW = x_ncl.shape
    Ci = lw1.shape[0]
    tile, hw_pad = _pick_hw_tiling(HW)
    if hw_pad != HW:
        pad = ((0, 0), (0, 0), (0, hw_pad - HW))
        x_ncl = jnp.pad(x_ncl, pad)
        r_ncl = jnp.pad(r_ncl, pad)
    n_tiles = hw_pad // tile

    data_spec = pl.BlockSpec((1, C, tile), lambda n, t: (n, 0, t))
    xg_spec = pl.BlockSpec((1, C, 1), lambda n, t: (n, 0, 0))
    full = lambda shape: pl.BlockSpec(shape, lambda n, t: (0,) * len(shape))

    itemsize = x_ncl.dtype.itemsize
    cost = pl.CostEstimate(
        flops=int(N * HW * C * (4 * Ci + 8)),
        transcendentals=int(N * HW * C),
        bytes_accessed=int(3 * N * C * HW * itemsize + 8 * C * Ci),
    )

    out = pl.pallas_call(
        _aff_local_kernel,
        out_shape=jax.ShapeDtypeStruct((N, C, hw_pad), x_ncl.dtype),
        grid_spec=pltpu.PrefetchScalarGridSpec(
            num_scalar_prefetch=0,
            grid=(N, n_tiles),
            in_specs=[
                data_spec,                       # x
                data_spec,                       # residual
                xg_spec,                         # precomputed global-branch logits
                full((Ci, C)), full((Ci, 1)),    # local conv1 (BN folded)
                full((C, Ci)), full((C, 1)),     # local conv2 (BN folded)
            ],
            out_specs=data_spec,
        ),
        compiler_params=pltpu.CompilerParams(
            dimension_semantics=("parallel", "parallel"),
            vmem_limit_bytes=32 * 1024 * 1024,
        ),
        cost_estimate=cost,
    )(x_ncl, r_ncl, xg_ncl, lw1, lb1, lw2, lb2)

    if hw_pad != HW:
        out = out[:, :, :HW]
    return out


# ---------------------------------------------------------------------------
# Global-attention pre-pass: full-image adaptive avg-pool + two tiny 1x1 convs
# on the (N, C) means.  Negligible FLOPs / bytes; done in plain JAX so the main
# kernel can tile the spatial axis freely.
# ---------------------------------------------------------------------------
def _global_branch(x_ncl, r_ncl, gw1, gb1, gw2, gb2):
    m = jnp.mean(x_ncl.astype(jnp.float32) + r_ncl.astype(jnp.float32),
                 axis=-1)                                                # (N, C)
    hg = jnp.maximum(
        jnp.einsum("ic,nc->ni", gw1, m, precision=_HI) + gb1[:, 0][None], 0.0)
    xg = jnp.einsum("ci,ni->nc", gw2, hg, precision=_HI) + gb2[:, 0][None]
    return xg[:, :, None].astype(jnp.float32)                            # (N, C, 1)


# ---------------------------------------------------------------------------
# Parameter setup (deterministic) + BN folding
# ---------------------------------------------------------------------------
def _fold_conv_bn(w, b, gamma, beta, mean, var, eps=1e-5):
    """1x1 conv (w: (Cout, Cin), b: (Cout,)) + eval-mode BN, folded into a
    left-matmul weight (Cout, Cin) and bias (Cout, 1) for the NCHW kernel."""
    scale = gamma / jnp.sqrt(var + eps)
    shift = beta - mean * scale
    w_f = w * scale[:, None]
    b_f = (b * scale + shift)[:, None]
    return w_f.astype(jnp.float32), b_f.astype(jnp.float32)


def make_aff_params(key, channels=64, r=4):
    ci = channels // r
    keys = jax.random.split(key, 16)
    k = iter(keys)

    def conv(kk, cout, cin):
        return jax.random.normal(kk, (cout, cin), jnp.float32) * 0.05

    def bn(kk, c):
        k1, k2, k3 = jax.random.split(kk, 3)
        gamma = 1.0 + 0.1 * jax.random.normal(k1, (c,), jnp.float32)
        beta = 0.1 * jax.random.normal(k2, (c,), jnp.float32)
        mean = 0.1 * jax.random.normal(k3, (c,), jnp.float32)
        var = jnp.ones((c,), jnp.float32) * 0.9
        return gamma, beta, mean, var

    lw1 = conv(next(k), ci, channels); lb1 = 0.01 * jax.random.normal(next(k), (ci,))
    lbn1 = bn(next(k), ci)
    lw2 = conv(next(k), channels, ci); lb2 = 0.01 * jax.random.normal(next(k), (channels,))
    lbn2 = bn(next(k), channels)
    gw1 = conv(next(k), ci, channels); gb1 = 0.01 * jax.random.normal(next(k), (ci,))
    gbn1 = bn(next(k), ci)
    gw2 = conv(next(k), channels, ci); gb2 = 0.01 * jax.random.normal(next(k), (channels,))
    gbn2 = bn(next(k), channels)

    p = {}
    p["lw1"], p["lb1"] = _fold_conv_bn(lw1, lb1, *lbn1)
    p["lw2"], p["lb2"] = _fold_conv_bn(lw2, lb2, *lbn2)
    p["gw1"], p["gb1"] = _fold_conv_bn(gw1, gb1, *gbn1)
    p["gw2"], p["gb2"] = _fold_conv_bn(gw2, gb2, *gbn2)
    return p


# ---------------------------------------------------------------------------
# Public wrapper: NCHW in, NCHW out (matches PyTorch module interface).
# Only reshapes -- no HBM transpose passes.
# ---------------------------------------------------------------------------
@jax.jit
def aff_forward(x, residual, params):
    N, C, H, W = x.shape
    x_ncl = x.reshape(N, C, H * W)
    r_ncl = residual.reshape(N, C, H * W)
    xg = _global_branch(x_ncl, r_ncl,
                        params["gw1"], params["gb1"],
                        params["gw2"], params["gb2"])
    out = _aff_pallas(x_ncl, r_ncl, xg,
                      params["lw1"], params["lb1"],
                      params["lw2"], params["lb2"])
    return out.reshape(N, C, H, W)


# ---------------------------------------------------------------------------
# Pure-JAX reference (same math, no Pallas) for sanity check
# ---------------------------------------------------------------------------
def aff_reference(x, residual, params):
    N, C, H, W = x.shape
    xp = x.reshape(N, C, H * W).astype(jnp.float32)
    rp = residual.reshape(N, C, H * W).astype(jnp.float32)
    xa = xp + rp

    hl = jnp.maximum(jnp.einsum("ic,ncl->nil", params["lw1"], xa, precision=_HI)
                     + params["lb1"][None], 0.0)
    xl = jnp.einsum("ci,nil->ncl", params["lw2"], hl, precision=_HI) + params["lb2"][None]

    m = jnp.mean(xa, axis=-1)
    hg = jnp.maximum(jnp.einsum("ic,nc->ni", params["gw1"], m, precision=_HI)
                     + params["gb1"][:, 0][None], 0.0)
    xg = jnp.einsum("ci,ni->nc", params["gw2"], hg, precision=_HI) + params["gb2"][:, 0][None]

    wei = jax.nn.sigmoid(xl + xg[:, :, None])
    out = 2.0 * xp * wei + 2.0 * rp * (1.0 - wei)
    return out.reshape(N, C, H, W)


if __name__ == "__main__":
    key = jax.random.PRNGKey(0)
    k_x, k_r, k_p = jax.random.split(key, 3)

    channels, r = 64, 4
    N, H, W = 2, 8, 8
    x = jax.random.normal(k_x, (N, channels, H, W), jnp.float32)
    residual = jax.random.normal(k_r, (N, channels, H, W), jnp.float32)
    params = make_aff_params(k_p, channels=channels, r=r)

    ref = aff_reference(x, residual, params)

    # f32 I/O path
    out = jax.block_until_ready(aff_forward(x, residual, params))
    assert out.shape == (N, channels, H, W)
    assert jnp.allclose(out, ref, atol=1e-4, rtol=1e-4), "f32 mismatch vs reference"

    # bf16 I/O path (halves HBM traffic; math remains f32 inside the kernel)
    out_bf16 = jax.block_until_ready(
        aff_forward(x.astype(jnp.bfloat16), residual.astype(jnp.bfloat16), params))
    assert out_bf16.dtype == jnp.bfloat16
    assert jnp.allclose(out_bf16.astype(jnp.float32), ref, atol=2e-1, rtol=5e-2), \
        "bf16 mismatch vs reference"

    print("KERNEL_OK")
</pallas_src>

<mosaic_0001>
module attributes {stable_mosaic.version = 11 : i64} {
  func.func @_aff_local_kernel(%arg0: i32, %arg1: i32, %arg2: memref<1x64x64xf32, #tpu.memory_space<vmem>>, %arg3: memref<1x64x64xf32, #tpu.memory_space<vmem>>, %arg4: memref<1x64x1xf32, #tpu.memory_space<vmem>>, %arg5: memref<16x64xf32, #tpu.memory_space<vmem>>, %arg6: memref<16x1xf32, #tpu.memory_space<vmem>>, %arg7: memref<64x16xf32, #tpu.memory_space<vmem>>, %arg8: memref<64x1xf32, #tpu.memory_space<vmem>>, %arg9: memref<1x64x64xf32, #tpu.memory_space<vmem>>) attributes {dimension_semantics = [#tpu.dimension_semantics<parallel>, #tpu.dimension_semantics<parallel>], iteration_bounds = array<i64: 2, 1>, scalar_prefetch = 0 : i64, scratch_operands = 0 : i64, tpu.core_type = #tpu.core_type<tc>, window_params = [{transform_indices = @transform_0, window_bounds = array<i64: 1, 64, 64>}, {transform_indices = @transform_1, window_bounds = array<i64: 1, 64, 64>}, {transform_indices = @transform_2, window_bounds = array<i64: 1, 64, 1>}, {pipeline_mode = #tpu.pipeline_mode<synchronous>, transform_indices = @transform_3, window_bounds = array<i64: 16, 64>}, {pipeline_mode = #tpu.pipeline_mode<synchronous>, transform_indices = @transform_4, window_bounds = array<i64: 16, 1>}, {pipeline_mode = #tpu.pipeline_mode<synchronous>, transform_indices = @transform_5, window_bounds = array<i64: 64, 16>}, {pipeline_mode = #tpu.pipeline_mode<synchronous>, transform_indices = @transform_6, window_bounds = array<i64: 64, 1>}, {transform_indices = @transform_7, window_bounds = array<i64: 1, 64, 64>}]} {
    %c0 = arith.constant 0 : index
    %c0_0 = arith.constant 0 : index
    %c0_1 = arith.constant 0 : index
    %0 = vector.load %arg2[%c0, %c0_0, %c0_1] : memref<1x64x64xf32, #tpu.memory_space<vmem>>, vector<1x64x64xf32>
    %1 = vector.shape_cast %0 : vector<1x64x64xf32> to vector<64x64xf32>
    %c0_2 = arith.constant 0 : index
    %c0_3 = arith.constant 0 : index
    %c0_4 = arith.constant 0 : index
    %2 = vector.load %arg3[%c0_2, %c0_3, %c0_4] : memref<1x64x64xf32, #tpu.memory_space<vmem>>, vector<1x64x64xf32>
    %3 = vector.shape_cast %2 : vector<1x64x64xf32> to vector<64x64xf32>
    %4 = arith.addf %1, %3 : vector<64x64xf32>
    %c0_5 = arith.constant 0 : index
    %c0_6 = arith.constant 0 : index
    %5 = vector.load %arg5[%c0_5, %c0_6] : memref<16x64xf32, #tpu.memory_space<vmem>>, vector<16x64xf32>
    %cst = arith.constant dense<0.000000e+00> : vector<16x64xf32>
    %6 = tpu.matmul %5, %4, %cst {dimension_numbers = #tpu.dot_dimension_numbers<[1], [0], [0], [1], [0, 0, 1, 1], [], []>, precision = #tpu.contract_precision<fp32>} : vector<16x64xf32>, vector<64x64xf32>, vector<16x64xf32> -> vector<16x64xf32>
    %c0_7 = arith.constant 0 : index
    %c0_8 = arith.constant 0 : index
    %7 = vector.load %arg6[%c0_7, %c0_8] : memref<16x1xf32, #tpu.memory_space<vmem>>, vector<16x1xf32>
    %8 = vector.broadcast %7 : vector<16x1xf32> to vector<16x64xf32>
    %9 = arith.addf %6, %8 : vector<16x64xf32>
    %cst_9 = arith.constant 0.000000e+00 : f32
    %10 = vector.broadcast %cst_9 : f32 to vector<16x64xf32>
    %11 = arith.maximumf %9, %10 : vector<16x64xf32>
    %c0_10 = arith.constant 0 : index
    %c0_11 = arith.constant 0 : index
    %12 = vector.load %arg7[%c0_10, %c0_11] : memref<64x16xf32, #tpu.memory_space<vmem>>, vector<64x16xf32>
    %cst_12 = arith.constant dense<0.000000e+00> : vector<64x64xf32>
    %13 = tpu.matmul %12, %11, %cst_12 {dimension_numbers = #tpu.dot_dimension_numbers<[1], [0], [0], [1], [0, 0, 1, 1], [], []>, precision = #tpu.contract_precision<fp32>} : vector<64x16xf32>, vector<16x64xf32>, vector<64x64xf32> -> vector<64x64xf32>
    %c0_13 = arith.constant 0 : index
    %c0_14 = arith.constant 0 : index
    %14 = vector.load %arg8[%c0_13, %c0_14] : memref<64x1xf32, #tpu.memory_space<vmem>>, vector<64x1xf32>
    %15 = vector.broadcast %14 : vector<64x1xf32> to vector<64x64xf32>
    %16 = arith.addf %13, %15 : vector<64x64xf32>
    %c0_15 = arith.constant 0 : index
    %c0_16 = arith.constant 0 : index
    %c0_17 = arith.constant 0 : index
    %17 = vector.load %arg4[%c0_15, %c0_16, %c0_17] : memref<1x64x1xf32, #tpu.memory_space<vmem>>, vector<1x64x1xf32>
    %18 = vector.shape_cast %17 : vector<1x64x1xf32> to vector<64x1xf32>
    %19 = vector.broadcast %18 : vector<64x1xf32> to vector<64x64xf32>
    %20 = arith.addf %16, %19 : vector<64x64xf32>
    %21 = arith.negf %20 : vector<64x64xf32>
    %22 = math.exp %21 : vector<64x64xf32>
    %cst_18 = arith.constant 1.000000e+00 : f32
    %23 = vector.broadcast %cst_18 : f32 to vector<64x64xf32>
    %24 = arith.addf %23, %22 : vector<64x64xf32>
    %25 = arith.divf %23, %24 : vector<64x64xf32>
    %26 = arith.subf %1, %3 : vector<64x64xf32>
    %27 = arith.mulf %25, %26 : vector<64x64xf32>
    %28 = arith.addf %3, %27 : vector<64x64xf32>
    %cst_19 = arith.constant 2.000000e+00 : f32
    %29 = vector.broadcast %cst_19 : f32 to vector<64x64xf32>
    %30 = arith.mulf %29, %28 : vector<64x64xf32>
    %c0_20 = arith.constant 0 : index
    %c0_21 = arith.constant 0 : index
    %c0_22 = arith.constant 0 : index
    %31 = vector.load %arg9[%c0_20, %c0_21, %c0_22] : memref<1x64x64xf32, #tpu.memory_space<vmem>>, vector<1x64x64xf32>
    %32 = vector.shape_cast %31 : vector<1x64x64xf32> to vector<64x64xf32>
    %33 = vector.shape_cast %30 : vector<64x64xf32> to vector<1x64x64xf32>
    tpu.vector_store %arg9[%c0_20, %c0_21, %c0_22], %33 {strides = array<i32>} : memref<1x64x64xf32, #tpu.memory_space<vmem>>, vector<1x64x64xf32>,
    return
  }
  func.func @transform_0(%arg0: i32, %arg1: i32) -> (i32, i32, i32) {
    %c0_i32 = arith.constant 0 : i32
    %c0_i32_0 = arith.constant 0 : i32
    return %arg0, %c0_i32, %arg1 : i32, i32, i32
  }
  func.func @transform_1(%arg0: i32, %arg1: i32) -> (i32, i32, i32) {
    %c0_i32 = arith.constant 0 : i32
    %c0_i32_0 = arith.constant 0 : i32
    return %arg0, %c0_i32, %arg1 : i32, i32, i32
  }
  func.func @transform_2(%arg0: i32, %arg1: i32) -> (i32, i32, i32) {
    %c0_i32 = arith.constant 0 : i32
    %c0_i32_0 = arith.constant 0 : i32
    %c0_i32_1 = arith.constant 0 : i32
    return %arg0, %c0_i32, %c0_i32_0 : i32, i32, i32
  }
  func.func @transform_3(%arg0: i32, %arg1: i32) -> (i32, i32) {
    %c0_i32 = arith.constant 0 : i32
    %c0_i32_0 = arith.constant 0 : i32
    %c0_i32_1 = arith.constant 0 : i32
    return %c0_i32, %c0_i32_0 : i32, i32
  }
  func.func @transform_4(%arg0: i32, %arg1: i32) -> (i32, i32) {
    %c0_i32 = arith.constant 0 : i32
    %c0_i32_0 = arith.constant 0 : i32
    %c0_i32_1 = arith.constant 0 : i32
    return %c0_i32, %c0_i32_0 : i32, i32
  }
  func.func @transform_5(%arg0: i32, %arg1: i32) -> (i32, i32) {
    %c0_i32 = arith.constant 0 : i32
    %c0_i32_0 = arith.constant 0 : i32
    %c0_i32_1 = arith.constant 0 : i32
    return %c0_i32, %c0_i32_0 : i32, i32
  }
  func.func @transform_6(%arg0: i32, %arg1: i32) -> (i32, i32) {
    %c0_i32 = arith.constant 0 : i32
    %c0_i32_0 = arith.constant 0 : i32
    %c0_i32_1 = arith.constant 0 : i32
    return %c0_i32, %c0_i32_0 : i32, i32
  }
  func.func @transform_7(%arg0: i32, %arg1: i32) -> (i32, i32, i32) {
    %c0_i32 = arith.constant 0 : i32
    %c0_i32_0 = arith.constant 0 : i32
    return %arg0, %c0_i32, %arg1 : i32, i32, i32
  }
}

</mosaic_0001>

<bundles_post_ra>
// kernel: aff_forward.1
= control target key start
LH: loop header
LB: loop body
LE: loop exit
PB: predicated region body
PF: predicated region fallthrough
CT: control target
= control target key end

     0   :  { %s1656_s24 = smov 0   ;;  %s1658_s25 = smov 0   ;;  %s2099_s0 = inlined_call_operand.vmem [shape: f32[2,64,64], index: 0, kind: input, shape index: {}]   ;;  %s2100_s1 = inlined_call_operand.vmem [shape: f32[2,64,64], index: 1, kind: input, shape index: {}]   ;;  %s2101_s2 = inlined_call_operand.vmem [shape: f32[2,64,1], index: 2, kind: input, shape index: {}]   ;;  %s2102_s3 = inlined_call_operand.vmem [shape: f32[16,64], index: 3, kind: input, shape index: {}]   ;;  %s2103_s4 = inlined_call_operand.vmem [shape: f32[16,1], index: 4, kind: input, shape index: {}]   ;;  %s2104_s5 = inlined_call_operand.vmem [shape: f32[64,16], index: 5, kind: input, shape index: {}]   ;;  %s2105_s6 = inlined_call_operand.vmem [shape: f32[64,1], index: 6, kind: input, shape index: {}]   ;;  %s2106_s7 = inlined_call_operand.vmem [shape: f32[2,64,64], index: 7, kind: output, shape index: {}]  }
   0x1   :  { %s1660_s26 = smov 0  }
   0x2 LB: > { %s29_s27 = sadd.s32 1, %s1609_s25  ;;  %p1498_p0 = scmp.ge.s32.totalorder %s1613_s26, 1  ;;  %s1613_s26 = sphi %s1660_s26, %s17_s26   ;;  %s1609_s25 = sphi %s1658_s25, %s2108_s25   ;;  %s1605_s24 = sphi %s1656_s24, %s2107_s24  }
   0x3   : > { %p31_p1 = scmp.ge.s32.totalorder %s29_s27, 2  ;;  %p281_p2 = scmp.lt.s32.totalorder %s1613_s26, 3 }
   0x5   : > { %s2110_s27 = smov (%p31_p1, %s29_s27), 0  ;;  %p282_p3 = pnand %p1498_p0, %p281_p2 }
   0x6   : > { %p332_p4 = scmp.lt.s32.totalorder (!%p282_p3), %s1605_s24, 1 }
   0x7   : > { %285 = sbr.rel (%p282_p3) target bundleno = 520 (0x208), region = 48 }
   0xc   : > { %v385_v0 = vld [vmem:[%s2102_s3] sm:$0xff]  ;;  %vm399_vm0 = vcmask 523264   ;;  %v388_v1 = vld [vmem:[%s2103_s4 + $0x8] sm:$0xff]  ;;  %v1615_v3 = vmov 0   ;;  %s2112_s24 = smov (!%p332_p4, %s1605_s24), 1  ;;  %vm732_vm1 = vcmask 130048  }
   0xd   : > { %v401_v2 = vsel %vm399_vm0, %v385_v0, 0  ;;  %1546 = vset.pattern.permute.xlu0 %v1615_v3  ;;  %1547 = vset.pattern.permute.xlu1 %v1615_v3  ;;  %s1683_s9 = sshll.u32 %s2112_s24, 6  ;;  %v386_v5 = vld [vmem:[%s2102_s3 + $0x8] sm:$0xff]  ;;  %v387_v6 = vld [vmem:[%s2103_s4] sm:$0xff] }
   0xe   : > { %396 = vperm.xlu0 %1546, %v388_v1   ;;  %1548 = vset.pattern.permute.xlu2 %v1615_v3  ;;  %v1681_v4 = vand.u32 4294901760, %v401_v2  ;;  %s1692_s14 = scalar_lea.vmem %s2099_s0, %s1683_s9  ;;  %s1698_s17 = scalar_lea.vmem %s2100_s1, %s1683_s9  ;;  %v404_v15 = vsel %vm399_vm0, %v386_v5, 0  ;;  %v688_v53 = vld [vmem:[%s2105_s6 + $0x20] sm:$0xff] }
   0xf   : > { %v368_v7 = vld [vmem:[%s1692_s14 + $0x38] sm:$0xff]  ;;  %v367_v9 = vld [vmem:[%s1692_s14 + $0x30] sm:$0xff]  ;;  %v366_v12 = vld [vmem:[%s1692_s14 + $0x28] sm:$0xff]  ;;  %v1741_v32 = vand.u32 4294901760, %v404_v15  ;;  %s1845_s29 = scalar_lea.vmem %s2101_s2, %s1683_s9  ;;  %s2032_s23 = scalar_lea.vmem %s2106_s7, %s1683_s9 }
  0x10   : > { %v376_v8 = vld [vmem:[%s1698_s17 + $0x38] sm:$0xff]  ;;  %v375_v11 = vld [vmem:[%s1698_s17 + $0x30] sm:$0xff]  ;;  %v374_v13 = vld [vmem:[%s1698_s17 + $0x28] sm:$0xff]  ;;  %v1710_v14 = vsub.f32 %v401_v2, %v1681_v4 }
  0x11   : > { %v384_v10 = vadd.f32 %v376_v8, %v368_v7  ;;  %v383_v16 = vadd.f32 %v375_v11, %v367_v9  ;;  %v382_v17 = vadd.f32 %v374_v13, %v366_v12  ;;  %v365_v18 = vld [vmem:[%s1692_s14 + $0x20] sm:$0xff]  ;;  %v364_v20 = vld [vmem:[%s1692_s14 + $0x18] sm:$0xff]  ;;  %v1722_v24 = vld [vmem:[%s1692_s14 + $0x10] sm:$0xff]  ;;  %v1778_v48 = vsub.f32 %v404_v15, %v1741_v32 }
  0x12   : > { %v373_v19 = vld [vmem:[%s1698_s17 + $0x20] sm:$0xff]  ;;  %v1719_v23 = vld [vmem:[%s1698_s17 + $0x18] sm:$0xff]  ;;  %v1725_v25 = vld [vmem:[%s1698_s17 + $0x10] sm:$0xff]  ;;  %v432_v37 = vand.u32 4294901760, %v1710_v14 }
  0x13   : > { %v1716_v21 = vand.u32 4294901760, %v384_v10  ;;  %v381_v22 = vadd.f32 %v373_v19, %v365_v18  ;;  %v1727_v26 = vand.u32 4294901760, %v383_v16  ;;  %v1729_v27 = vand.u32 4294901760, %v382_v17  ;;  %v1733_v29 = vld [vmem:[%s1692_s14 + $0x8] sm:$0xff]  ;;  %v1739_v31 = vld [vmem:[%s1692_s14] sm:$0xff]  ;;  %v691_v13 = vld [vmem:[%s2105_s6 + $0x38] sm:$0xff] }
  0x14   : > { %v380_v28 = vadd.f32 %v1719_v23, %v364_v20  ;;  %v1736_v30 = vld [vmem:[%s1698_s17 + $0x8] sm:$0xff]  ;;  %v379_v35 = vadd.f32 %v1725_v25, %v1722_v24  ;;  %v1752_v36 = vld [vmem:[%s1698_s17] sm:$0xff]  ;;  %v433_v52 = vsub.f32 %v1710_v14, %v432_v37 }
  0x15   : > { %415 = vmatpush.msra.mxu0 %v1716_v21  ;;  %v1744_v33 = vand.u32 4294901760, %v381_v22  ;;  %v1747_v34 = vsub.f32 %v384_v10, %v1716_v21  ;;  %v1758_v39 = vsub.f32 %v383_v16, %v1727_v26  ;;  %v378_v40 = vadd.f32 %v1736_v30, %v1733_v29 }
  0x16   : > { %391 = vperm.xlu0 %1546, %v387_v6   ;;  %v1755_v38 = vand.u32 4294901760, %v380_v28  ;;  %v1764_v42 = vand.u32 4294901760, %v379_v35  ;;  %v1767_v43 = vsub.f32 %v382_v17, %v1729_v27  ;;  %v377_v44 = vadd.f32 %v1752_v36, %v1739_v31 }
  0x17   : > { %417 = vmatpush.msra.mxu0 %v1727_v26  ;;  %v457_v41 = vand.u32 4294901760, %v1747_v34  ;;  %v463_v45 = vand.u32 4294901760, %v1758_v39  ;;  %v1772_v46 = vand.u32 4294901760, %v378_v40  ;;  %v1775_v47 = vsub.f32 %v381_v22, %v1744_v33  ;;  %v1135_v22 = vld [vmem:[%s1845_s29 + $0x10] sm:$0xff] }
  0x18   : > { %v469_v50 = vand.u32 4294901760, %v1767_v43  ;;  %v1785_v51 = vand.u32 4294901760, %v377_v44  ;;  %v1798_v56 = vsub.f32 %v380_v28, %v1755_v38  ;;  %v1801_v57 = vsub.f32 %v379_v35, %v1764_v42  ;;  %v1138_v28 = vld [vmem:[%s1845_s29 + $0x28] sm:$0xff] }
  0x19   : > { %419 = vmatpush.msra.mxu0 %v1729_v27  ;;  %v458_v49 = vsub.f32 %v1747_v34, %v457_v41  ;;  %v464_v54 = vsub.f32 %v1758_v39, %v463_v45  ;;  %v475_v55 = vand.u32 4294901760, %v1775_v47  ;;  %v1808_v60 = vsub.f32 %v378_v40, %v1772_v46 }
  0x1a   : > { %v470_v59 = vsub.f32 %v1767_v43, %v469_v50  ;;  %v1811_v61 = vsub.f32 %v377_v44, %v1785_v51  ;;  %v481_v0 = vand.u32 4294901760, %v1798_v56  ;;  %v487_v1 = vand.u32 4294901760, %v1801_v57 }
  0x1b   : > { %421 = vmatpush.msra.mxu0 %v1744_v33  ;;  %v459_v58 = vand.u32 4294901760, %v458_v49  ;;  %v465_v62 = vand.u32 4294901760, %v464_v54  ;;  %v476_v63 = vsub.f32 %v1775_v47, %v475_v55  ;;  %v493_v3 = vand.u32 4294901760, %v1808_v60  ;;  %v677_v49 = vld [vmem:[%s2104_s5 + $0x8] sm:$0xff] }
  0x1c   : > { %v471_v2 = vand.u32 4294901760, %v470_v59  ;;  %v482_v5 = vsub.f32 %v1798_v56, %v481_v0  ;;  %v488_v7 = vsub.f32 %v1801_v57, %v487_v1  ;;  %v499_v8 = vand.u32 4294901760, %v1811_v61 }
  0x1d   : > { %423 = vmatpush.msra.mxu0 %v1755_v38  ;;  %460 = vmatpush.msra.mxu1 %v459_v58  ;;  %v477_v6 = vand.u32 4294901760, %v476_v63  ;;  %v434_v9 = vand.u32 4294901760, %v433_v52  ;;  %v440_v10 = vand.u32 4294901760, %v1778_v48  ;;  %v494_v12 = vsub.f32 %v1808_v60, %v493_v3 }
  0x1e   : > { %714 = vperm.xlu0 %1546, %v688_v53   ;;  %v483_v11 = vand.u32 4294901760, %v482_v5  ;;  %v489_v15 = vand.u32 4294901760, %v488_v7  ;;  %v500_v16 = vsub.f32 %v1811_v61, %v499_v8  ;;  %v684_v53 = vld [vmem:[%s2105_s6] sm:$0xff]  ;;  %v685_v5 = vld [vmem:[%s2105_s6 + $0x8] sm:$0xff] }
  0x1f   : > { %425 = vmatpush.msra.mxu0 %v1764_v42  ;;  %466 = vmatpush.msra.mxu1 %v465_v62  ;;  %v441_v17 = vsub.f32 %v1778_v48, %v440_v10  ;;  %v495_v18 = vand.u32 4294901760, %v494_v12 }
  0x20   : > { %v501_v19 = vand.u32 4294901760, %v500_v16  ;;  %694 = vperm.xlu1 %1547, %v684_v53   ;;  %v679_v16 = vld [vmem:[%s2104_s5 + $0x18] sm:$0xff] }
  0x21   : > { %427 = vmatpush.msra.mxu0 %v1772_v46  ;;  %472 = vmatpush.msra.mxu1 %v471_v2  ;;  %v442_v20 = vand.u32 4294901760, %v441_v17 }
  0x23   : > { %429 = vmatpush.msra.mxu0 %v1785_v51  ;;  %478 = vmatpush.msra.mxu1 %v477_v6 }
  0x24   : > { %435 = vmatmul.f32.vlgmr.msra.gmra.mxu0 %v434_v9 }
  0x25   : > { %484 = vmatpush.msra.mxu1 %v483_v11  ;;  %522 = vmatpush.msrb.mxu0 %v1747_v34 }
  0x26   : > { %729 = vperm.xlu0 %1546, %v691_v13  }
  0x27   : > { %490 = vmatpush.msra.mxu1 %v489_v15  ;;  %525 = vmatpush.msrb.mxu0 %v1758_v39 }
  0x28   : > { %699 = vperm.xlu1 %1547, %v685_v5  }
  0x29   : > { %496 = vmatpush.msra.mxu1 %v495_v18  ;;  %528 = vmatpush.msrb.mxu0 %v1767_v43 }
  0x2b   : > { %502 = vmatpush.msra.mxu1 %v501_v19  ;;  %531 = vmatpush.msrb.mxu0 %v1775_v47 }
  0x2c   : > { %443 = vmatmul.f32.gmra.mxu0 %v442_v20  ;;  %504 = vmatmul.f32.vlgmr.msra.gmra.mxu1 %v1681_v4 }
  0x2d   : > { %564 = vmatpush.msrb.mxu1 %v1716_v21  ;;  %534 = vmatpush.msrb.mxu0 %v1798_v56  ;;  %v737_v56 = vsel %vm732_vm1, %v677_v49, 0 }
  0x2e   : > { %1153 = vperm.xlu0 %1546, %v1135_v22  }
  0x2f   : > { %566 = vmatpush.msrb.mxu1 %v1727_v26  ;;  %537 = vmatpush.msrb.mxu0 %v1801_v57 }
  0x31   : > { %568 = vmatpush.msrb.mxu1 %v1729_v27  ;;  %540 = vmatpush.msrb.mxu0 %v1808_v60  ;;  %v1909_v60 = vand.u32 4294901760, %v737_v56 }
  0x33   : > { %570 = vmatpush.msrb.mxu1 %v1744_v33  ;;  %543 = vmatpush.msrb.mxu0 %v1811_v61 }
  0x34   : > { %508 = vmatmul.f32.gmra.mxu1 %v1741_v32  ;;  %546 = vmatmul.f32.vlgmr.msrb.gmra.mxu0 %v1710_v14 }
  0x35   : > { %572 = vmatpush.msrb.mxu1 %v1755_v38  ;;  %603 = vmatpush.msra.mxu0 %v457_v41  ;;  %v676_v41 = vld [vmem:[%s2104_s5] sm:$0xff] }
  0x36   : > { %1168 = vperm.xlu0 %1546, %v1138_v28   ;;  %v743_v28 = vsel %vm732_vm1, %v679_v16, 0  ;;  %v1137_v16 = vld [vmem:[%s1845_s29 + $0x20] sm:$0xff] }
  0x37   : > { %574 = vmatpush.msrb.mxu1 %v1764_v42  ;;  %607 = vmatpush.msra.mxu0 %v463_v45 }
  0x39   : > { %576 = vmatpush.msrb.mxu1 %v1772_v46  ;;  %611 = vmatpush.msra.mxu0 %v469_v50 }
  0x3b   : > { %578 = vmatpush.msrb.mxu1 %v1785_v51  ;;  %615 = vmatpush.msra.mxu0 %v475_v55 }
  0x3c   : > { %551 = vmatmul.f32.gmra.mxu0 %v1778_v48  ;;  %582 = vmatmul.f32.vlgmr.msrb.gmra.mxu1 %v432_v37 }
  0x3d   : > { %650 = vmatpush.msra.mxu1 %v1716_v21  ;;  %619 = vmatpush.msra.mxu0 %v481_v0  ;;  %v678_v0 = vld [vmem:[%s2104_s5 + $0x10] sm:$0xff] }
  0x3f   : > { %652 = vmatpush.msra.mxu1 %v1727_v26  ;;  %623 = vmatpush.msra.mxu0 %v487_v1 }
  0x41   : > { %654 = vmatpush.msra.mxu1 %v1729_v27  ;;  %627 = vmatpush.msra.mxu0 %v493_v3  ;;  %v784_v3 = vsub.f32 %v737_v56, %v1909_v60 }
  0x43   : > { %656 = vmatpush.msra.mxu1 %v1744_v33  ;;  %631 = vmatpush.msra.mxu0 %v499_v8  ;;  %v740_v8 = vsel %vm732_vm1, %v678_v0, 0  ;;  %v785_v11 = vand.u32 4294901760, %v784_v3 }
  0x44   : > { %588 = vmatmul.f32.gmra.mxu1 %v440_v10  ;;  %633 = vmatmul.f32.vlgmr.msra.gmra.mxu0 %v1681_v4  ;;  %v1919_v12 = vand.u32 4294901760, %v740_v8 }
  0x45   : > { %658 = vmatpush.msra.mxu1 %v1755_v38  ;;  %v786_v18 = vsub.f32 %v784_v3, %v785_v11 }
  0x46   : > { %v792_v19 = vsub.f32 %v740_v8, %v1919_v12 }
  0x47   : > { %660 = vmatpush.msra.mxu1 %v1764_v42 }
  0x49   : > { %662 = vmatpush.msra.mxu1 %v1772_v46 }
  0x4b   : > { %664 = vmatpush.msra.mxu1 %v1785_v51 }
  0x4c   : > { %637 = vmatmul.f32.gmra.mxu0 %v1741_v32  ;;  %666 = vmatmul.f32.vlgmr.msra.gmra.mxu1 %v1681_v4 }
  0x54   : > { %670 = vmatmul.f32.gmra.mxu1 %v1741_v32  ;;  %v734_v32 = vsel %vm732_vm1, %v676_v41, 0 }
  0x55   : > { %v1899_v46 = vand.u32 4294901760, %v734_v32 }
  0x57   : > { %v776_v52 = vsub.f32 %v734_v32, %v1899_v46 }
  0x59   : > { %v777_v59 = vand.u32 4294901760, %v776_v52 }
  0x5b   : > { %v778_v2 = vsub.f32 %v776_v52, %v777_v59 }
  0x5d   : > { %v779_v10 = vand.u32 4294901760, %v778_v2 }
  0x80   : > { %v397_v34 = vpop.permute.xlu0 %396 }
  0x88   : > { %v392_v38 = vpop.permute.xlu0 %391 }
  0xa1   : > { %v436_v14 = vpop.f32.mrf.mxu0 }
  0xa2   : > { %v437_v39 = vadd.f32 %v436_v14, %v392_v38 }
  0xa9   : > { %v444_v21 = vpop.f32.mrf.mxu0  ;;  %v505_v26 = vpop.f32.mrf.mxu1 }
  0xaa   : > { %v506_v42 = vadd.f32 %v505_v26, %v437_v39  ;;  %v445_v44 = vadd.f32 %v444_v21, %v397_v34  ;;  %v787_v21 = vand.u32 4294901760, %v786_v18  ;;  %v793_v26 = vand.u32 4294901760, %v792_v19  ;;  %v680_v34 = vld [vmem:[%s2104_s5 + $0x20] sm:$0xff] }
  0xab   : > { %v746_v38 = vsel %vm732_vm1, %v680_v34, 0 }
  0xac   : > { %v1934_v41 = vand.u32 4294901760, %v746_v38 }
  0xb1   : > { %v509_v27 = vpop.f32.mrf.mxu1  ;;  %v547_v33 = vpop.f32.mrf.mxu0 }
  0xb2   : > { %v548_v43 = vadd.f32 %v547_v33, %v506_v42  ;;  %v510_v50 = vadd.f32 %v509_v27, %v445_v44  ;;  %v1926_v27 = vand.u32 4294901760, %v743_v28  ;;  %v681_v42 = vld [vmem:[%s2104_s5 + $0x28] sm:$0xff] }
  0xb3   : > { %v749_v32 = vsel %vm732_vm1, %v681_v42, 0 }
  0xb9   : > { %v552_v35 = vpop.f32.mrf.mxu0  ;;  %v583_v37 = vpop.f32.mrf.mxu1 }
  0xba   : > { %v584_v45 = vadd.f32 %v583_v37, %v548_v43  ;;  %v553_v54 = vadd.f32 %v552_v35, %v510_v50  ;;  %v794_v35 = vsub.f32 %v792_v19, %v793_v26  ;;  %v800_v37 = vsub.f32 %v743_v28, %v1926_v27 }
  0xbb   : > { %v808_v43 = vsub.f32 %v746_v38, %v1934_v41 }
  0xbc   : > { %v795_v39 = vand.u32 4294901760, %v794_v35 }
  0xc1   : > { %v589_v40 = vpop.f32.mrf.mxu1  ;;  %v634_v4 = vpop.f32.mrf.mxu0 }
  0xc2   : > { %v635_v47 = vadd.f32 %v634_v4, %v584_v45  ;;  %v590_v58 = vadd.f32 %v589_v40, %v553_v54  ;;  %v801_v40 = vand.u32 4294901760, %v800_v37  ;;  %v809_v45 = vand.u32 4294901760, %v808_v43 }
  0xc4   : > { %v802_v4 = vsub.f32 %v800_v37, %v801_v40  ;;  %v810_v49 = vsub.f32 %v808_v43, %v809_v45 }
  0xc6   : > { %v803_v44 = vand.u32 4294901760, %v802_v4  ;;  %v811_v54 = vand.u32 4294901760, %v810_v49 }
  0xc9   : > { %v667_v48 = vpop.f32.mrf.mxu1  ;;  %v638_v57 = vpop.f32.mrf.mxu0 }
  0xca   : > { %v668_v51 = vadd.f32 %v667_v48, %v635_v47  ;;  %v639_v61 = vadd.f32 %v638_v57, %v590_v58  ;;  %v1942_v47 = vand.u32 4294901760, %v749_v32  ;;  %v682_v48 = vld [vmem:[%s2104_s5 + $0x30] sm:$0xff]  ;;  %v683_v57 = vld [vmem:[%s2104_s5 + $0x38] sm:$0xff] }
  0xcb   : > { %v752_v53 = vsel %vm732_vm1, %v682_v48, 0 }
  0xcc   : > { %v674_v55 = vmax.f32 %v668_v51, 0.0  ;;  %v816_v50 = vsub.f32 %v749_v32, %v1942_v47  ;;  %v686_v51 = vld [vmem:[%s2105_s6 + $0x10] sm:$0xff]  ;;  %v823_v56 = vand.u32 4294901760, %v752_v53 }
  0xcd   : > { %704 = vperm.xlu2 %1548, %v686_v51   ;;  %v715_v51 = vpop.permute.xlu0 %714 }
  0xce   : > { %v773_v62 = vand.u32 4294901760, %v674_v55 }
  0xd0   : > { %v861_v6 = vsub.f32 %v674_v55, %v773_v62  ;;  %v817_v55 = vand.u32 4294901760, %v816_v50 }
  0xd1   : > { %v671_v63 = vpop.f32.mrf.mxu1 }
  0xd2   : > { %v672_v1 = vadd.f32 %v671_v63, %v639_v61  ;;  %v862_v15 = vand.u32 4294901760, %v861_v6  ;;  %v818_v58 = vsub.f32 %v816_v50, %v817_v55  ;;  %v687_v61 = vld [vmem:[%s2105_s6 + $0x18] sm:$0xff] }
  0xd4   : > { %v675_v7 = vmax.f32 %v672_v1, 0.0  ;;  %v863_v22 = vsub.f32 %v861_v6, %v862_v15  ;;  %v819_v63 = vand.u32 4294901760, %v818_v58 }
  0xd5   : > { %709 = vperm.xlu2 %1548, %v687_v61  }
  0xd6   : > { %v771_v9 = vand.u32 4294901760, %v675_v7  ;;  %v864_v33 = vand.u32 4294901760, %v863_v22 }
  0xd8   : > { %v855_v13 = vsub.f32 %v675_v7, %v771_v9  ;;  %772 = vmatpush.msra.mxu2 %v771_v9  ;;  %975 = vmatpush.msrb.mxu1 %v771_v9 }
  0xda   : > { %774 = vmatpush.msra.mxu2 %v773_v62  ;;  %915 = vmatpush.msrb.mxu0 %v855_v13  ;;  %v856_v17 = vand.u32 4294901760, %v855_v13 }
  0xdb   : > { %977 = vmatpush.msrb.mxu1 %v773_v62  ;;  %780 = vmatmul.f32.vlgmr.msra.gmra.mxu2 %v779_v10  ;;  %v690_v10 = vld [vmem:[%s2105_s6 + $0x30] sm:$0xff] }
  0xdc   : > { %918 = vmatpush.msrb.mxu0 %v861_v6  ;;  %1044 = vmatpush.msrb.mxu2 %v856_v17  ;;  %v857_v20 = vsub.f32 %v855_v13, %v856_v17  ;;  %v1139_v13 = vld [vmem:[%s1845_s29 + $0x30] sm:$0xff]  ;;  %v1140_v17 = vld [vmem:[%s1845_s29 + $0x38] sm:$0xff] }
  0xdd   : > { %921 = vmatmul.f32.vlgmr.msrb.gmra.mxu0 %v776_v52  ;;  %981 = vmatmul.f32.vlgmr.msrb.gmra.mxu1 %v777_v59  ;;  %v689_v52 = vld [vmem:[%s2105_s6 + $0x28] sm:$0xff]  ;;  %v824_v59 = vsub.f32 %v752_v53, %v823_v56 }
  0xde   : > { %1048 = vmatpush.msrb.mxu2 %v862_v15  ;;  %v858_v14 = vand.u32 4294901760, %v857_v20  ;;  %719 = vperm.xlu1 %1547, %v689_v52   ;;  %v1134_v15 = vld [vmem:[%s1845_s29 + $0x8] sm:$0xff] }
  0xdf   : > { %v825_v0 = vand.u32 4294901760, %v824_v59  ;;  %724 = vperm.xlu2 %1548, %v690_v10  }
  0xe0   : > { %859 = vmatpush.msra.mxu3 %v858_v14 }
  0xe1   : > { %v826_v2 = vsub.f32 %v824_v59, %v825_v0 }
  0xe2   : > { %865 = vmatpush.msra.mxu3 %v864_v33 }
  0xe3   : > { %788 = vmatmul.f32.gmra.mxu2 %v787_v21  ;;  %867 = vmatmul.f32.vlgmr.msra.gmra.mxu3 %v1899_v46  ;;  %v827_v5 = vand.u32 4294901760, %v826_v2 }
  0xe4   : > { %1097 = vmatpush.msrb.mxu3 %v771_v9  ;;  %v1133_v9 = vld [vmem:[%s1845_s29] sm:$0xff] }
  0xe5   : > { %926 = vmatmul.f32.gmra.mxu0 %v784_v3  ;;  %987 = vmatmul.f32.gmra.mxu1 %v785_v11  ;;  %v1136_v11 = vld [vmem:[%s1845_s29 + $0x18] sm:$0xff] }
  0xe6   : > { %1099 = vmatpush.msrb.mxu3 %v773_v62  ;;  %v755_v62 = vsel %vm732_vm1, %v683_v57, 0  ;;  %1143 = vperm.xlu1 %1547, %v1133_v9  }
  0xe7   : > { %v831_v1 = vand.u32 4294901760, %v755_v62  ;;  %1148 = vperm.xlu2 %1548, %v1134_v15  }
  0xe9   : > { %v832_v3 = vsub.f32 %v755_v62, %v831_v1 }
  0xeb   : > { %796 = vmatmul.f32.gmra.mxu2 %v795_v39  ;;  %871 = vmatmul.f32.gmra.mxu3 %v1909_v60  ;;  %v833_v6 = vand.u32 4294901760, %v832_v3 }
  0xed   : > { %931 = vmatmul.f32.gmra.mxu0 %v792_v19  ;;  %993 = vmatmul.f32.gmra.mxu1 %v793_v26  ;;  %v834_v7 = vsub.f32 %v832_v3, %v833_v6 }
  0xee   : > { %1158 = vperm.xlu1 %1547, %v1136_v11  }
  0xef   : > { %v835_v8 = vand.u32 4294901760, %v834_v7  ;;  %1163 = vperm.xlu2 %1548, %v1137_v16  }
  0xf3   : > { %804 = vmatmul.f32.gmra.mxu2 %v803_v44  ;;  %875 = vmatmul.f32.gmra.mxu3 %v1919_v12 }
  0xf5   : > { %936 = vmatmul.f32.gmra.mxu0 %v800_v37  ;;  %999 = vmatmul.f32.gmra.mxu1 %v801_v40 }
  0xf6   : > { %1173 = vperm.xlu1 %1547, %v1139_v13  }
  0xf7   : > { %1178 = vperm.xlu2 %1548, %v1140_v17  }
  0xfb   : > { %812 = vmatmul.f32.gmra.mxu2 %v811_v54  ;;  %879 = vmatmul.f32.gmra.mxu3 %v1926_v27 }
  0xfd   : > { %941 = vmatmul.f32.gmra.mxu0 %v808_v43  ;;  %1005 = vmatmul.f32.gmra.mxu1 %v809_v45 }
 0x103   : > { %820 = vmatmul.f32.gmra.mxu2 %v819_v63  ;;  %883 = vmatmul.f32.gmra.mxu3 %v1934_v41 }
 0x105   : > { %946 = vmatmul.f32.gmra.mxu0 %v816_v50  ;;  %1011 = vmatmul.f32.gmra.mxu1 %v817_v55 }
 0x10b   : > { %828 = vmatmul.f32.gmra.mxu2 %v827_v5  ;;  %887 = vmatmul.f32.gmra.mxu3 %v1942_v47 }
 0x10d   : > { %951 = vmatmul.f32.gmra.mxu0 %v824_v59  ;;  %1017 = vmatmul.f32.gmra.mxu1 %v825_v0 }
 0x113   : > { %836 = vmatmul.f32.gmra.mxu2 %v835_v8  ;;  %891 = vmatmul.f32.gmra.mxu3 %v823_v56 }
 0x115   : > { %956 = vmatmul.f32.gmra.mxu0 %v832_v3  ;;  %1023 = vmatmul.f32.gmra.mxu1 %v833_v6  ;;  %v2007_v6 = vpop.permute.xlu0 %729 }
 0x11b   : > { %895 = vmatmul.f32.gmra.mxu3 %v831_v1  ;;  %1050 = vmatmul.f32.vlgmr.msrb.gmra.mxu2 %v1899_v46 }
 0x123   : > { %1054 = vmatmul.f32.gmra.mxu2 %v1909_v60  ;;  %1101 = vmatmul.f32.vlgmr.msrb.gmra.mxu3 %v1899_v46 }
 0x127   : > { %v705_v39 = vpop.permute.xlu2 %704 }
 0x12b   : > { %1058 = vmatmul.f32.gmra.mxu2 %v1919_v12  ;;  %1105 = vmatmul.f32.gmra.mxu3 %v1909_v60 }
 0x12f   : > { %v710_v50 = vpop.permute.xlu2 %709 }
 0x133   : > { %1062 = vmatmul.f32.gmra.mxu2 %v1926_v27  ;;  %1109 = vmatmul.f32.gmra.mxu3 %v1919_v12 }
 0x139   : > { %v2005_v0 = vpop.permute.xlu2 %724 }
 0x13b   : > { %1066 = vmatmul.f32.gmra.mxu2 %v1934_v41  ;;  %1113 = vmatmul.f32.gmra.mxu3 %v1926_v27  ;;  %v695_v27 = vpop.permute.xlu1 %694 }
 0x141   : > { %v1149_v16 = vpop.permute.xlu2 %1148 }
 0x143   : > { %1070 = vmatmul.f32.gmra.mxu2 %v1942_v47  ;;  %1117 = vmatmul.f32.gmra.mxu3 %v1934_v41  ;;  %v700_v38 = vpop.permute.xlu1 %699 }
 0x14b   : > { %1074 = vmatmul.f32.gmra.mxu2 %v823_v56  ;;  %1121 = vmatmul.f32.gmra.mxu3 %v1942_v47 }
 0x150   : > { %v2001_v44 = vpop.permute.xlu1 %719 }
 0x153   : > { %1078 = vmatmul.f32.gmra.mxu2 %v831_v1  ;;  %1125 = vmatmul.f32.gmra.mxu3 %v823_v56 }
 0x158   : > { %v1144_v56 = vpop.permute.xlu1 %1143 }
 0x15a   : > { %v922_v35 = vpop.f32.mrf.mxu0  ;;  %v982_v37 = vpop.f32.mrf.mxu1 }
 0x15b   : > { %1129 = vmatmul.f32.gmra.mxu3 %v831_v1 }
 0x15e   : > { %v781_v46 = vpop.f32.mrf.mxu2 }
 0x15f   : > { %v782_v42 = vadd.f32 %v781_v46, %v695_v27 }
 0x162   : > { %v927_v4 = vpop.f32.mrf.mxu0  ;;  %v988_v32 = vpop.f32.mrf.mxu1 }
 0x166   : > { %v789_v60 = vpop.f32.mrf.mxu2  ;;  %v868_v12 = vpop.f32.mrf.mxu3 }
 0x167   : > { %v869_v43 = vadd.f32 %v868_v12, %v782_v42  ;;  %v790_v49 = vadd.f32 %v789_v60, %v700_v38 }
 0x169   : > { %v923_v48 = vadd.f32 %v922_v35, %v869_v43 }
 0x16a   : > { %v932_v54 = vpop.f32.mrf.mxu0  ;;  %v994_v62 = vpop.f32.mrf.mxu1 }
 0x16b   : > { %v983_v52 = vadd.f32 %v982_v37, %v923_v48 }
 0x16e   : > { %v797_v18 = vpop.f32.mrf.mxu2  ;;  %v872_v19 = vpop.f32.mrf.mxu3 }
 0x16f   : > { %v873_v53 = vadd.f32 %v872_v19, %v790_v49  ;;  %v798_v61 = vadd.f32 %v797_v18, %v705_v39 }
 0x171   : > { %v928_v59 = vadd.f32 %v927_v4, %v873_v53  ;;  %v1154_v4 = vpop.permute.xlu0 %1153 }
 0x172   : > { %v937_v7 = vpop.f32.mrf.mxu0  ;;  %v1000_v17 = vpop.f32.mrf.mxu1 }
 0x173   : > { %v989_v2 = vadd.f32 %v988_v32, %v928_v59 }
 0x176   : > { %v805_v20 = vpop.f32.mrf.mxu2  ;;  %v876_v22 = vpop.f32.mrf.mxu3 }
 0x177   : > { %v877_v3 = vadd.f32 %v876_v22, %v798_v61  ;;  %v806_v13 = vadd.f32 %v805_v20, %v710_v50  ;;  %v1159_v61 = vpop.permute.xlu1 %1158 }
 0x179   : > { %v933_v11 = vadd.f32 %v932_v54, %v877_v3  ;;  %v1341_v3 = vsub.f32 %v1739_v31, %v1752_v36 }
 0x17a   : > { %v942_v39 = vpop.f32.mrf.mxu0  ;;  %v1006_v48 = vpop.f32.mrf.mxu1 }
 0x17b   : > { %v995_v12 = vadd.f32 %v994_v62, %v933_v11 }
 0x17e   : > { %v1987_v28 = vpop.f32.mrf.mxu2  ;;  %v880_v14 = vpop.f32.mrf.mxu3 }
 0x17f   : > { %v881_v18 = vadd.f32 %v880_v14, %v806_v13  ;;  %v814_v20 = vadd.f32 %v1987_v28, %v715_v51 }
 0x181   : > { %v938_v38 = vadd.f32 %v937_v7, %v881_v18 }
 0x182   : > { %v947_v62 = vpop.f32.mrf.mxu0  ;;  %v1012_v11 = vpop.f32.mrf.mxu1 }
 0x186   : > { %v1989_v21 = vpop.f32.mrf.mxu2  ;;  %v1991_v26 = vpop.f32.mrf.mxu3 }
 0x187   : > { %v885_v14 = vadd.f32 %v1991_v26, %v814_v20  ;;  %v822_v28 = vadd.f32 %v1989_v21, %v2001_v44 }
 0x189   : > { %v943_v59 = vadd.f32 %v942_v39, %v885_v14 }
 0x18e   : > { %v1993_v33 = vpop.f32.mrf.mxu2  ;;  %v1995_v34 = vpop.f32.mrf.mxu3 }
 0x196   : > { %v1997_v40 = vpop.f32.mrf.mxu2  ;;  %v1999_v41 = vpop.f32.mrf.mxu3 }
 0x19e   : > { %v2003_v45 = vpop.f32.mrf.mxu3  ;;  %v1051_v47 = vpop.f32.mrf.mxu2 }
 0x19f   : > { %v1052_v55 = vadd.f32 %v1051_v47, %v983_v52  ;;  %v1001_v47 = vadd.f32 %v1000_v17, %v938_v38  ;;  %v1164_v38 = vpop.permute.xlu2 %1163 }
 0x1a6   : > { %v1055_v57 = vpop.f32.mrf.mxu2  ;;  %v1102_v58 = vpop.f32.mrf.mxu3 }
 0x1a7   : > { %v1103_v63 = vadd.f32 %v1102_v58, %v1052_v55  ;;  %v1056_v8 = vadd.f32 %v1055_v57, %v989_v2 }
 0x1a9   : > { %v1181_v1 = vadd.f32 %v1144_v56, %v1103_v63 }
 0x1ab   : > { %v1507_v5 = vmul.f32 -1.442695, %v1181_v1 }
 0x1ad   : > { %1549 = vpow2.f32 %v1507_v5 }
 0x1ae   : > { %v1059_v9 = vpop.f32.mrf.mxu2  ;;  %v1106_v10 = vpop.f32.mrf.mxu3 }
 0x1af   : > { %v1107_v15 = vadd.f32 %v1106_v10, %v1056_v8  ;;  %v1060_v22 = vadd.f32 %v1059_v9, %v995_v12  ;;  %v1007_v9 = vadd.f32 %v1006_v48, %v943_v59  ;;  %v889_v10 = vadd.f32 %v1995_v34, %v822_v28  ;;  %v1169_v59 = vpop.permute.xlu0 %1168 }
 0x1b1   : > { %v1182_v46 = vadd.f32 %v1149_v16, %v1107_v15  ;;  %v948_v18 = vadd.f32 %v947_v62, %v889_v10 }
 0x1b3   : > { %v1550_v60 = vpop.eup %1549  ;;  %v1508_v19 = vmul.f32 -1.442695, %v1182_v46  ;;  %v830_v46 = vadd.f32 %v1993_v33, %v2005_v0  ;;  %v1342_v33 = vsub.f32 %v1733_v29, %v1736_v30 }
 0x1b4   : > { %v1213_v27 = vadd.f32 1.0, %v1550_v60 }
 0x1b5   : > { %1551 = vpow2.f32 %v1508_v19 }
 0x1b6   : > { %1553 = vrcp.f32 %v1213_v27  ;;  %v1063_v35 = vpop.f32.mrf.mxu2  ;;  %v1110_v37 = vpop.f32.mrf.mxu3  ;;  %v1232_v51 = vand.u32 2147483648, %v1213_v27  ;;  %v1230_v26 = vand.u32 2147483647, %v1213_v27  ;;  %vm1226_vm3 = vweird.f32 %v1213_v27 }
 0x1b7   : > { %v1111_v42 = vadd.f32 %v1110_v37, %v1060_v22  ;;  %v1064_v54 = vadd.f32 %v1063_v35, %v1001_v47 }
 0x1b8   : > { %v1233_v21 = vor.u32 1.1754944e-38, %v1232_v51  ;;  %vm1231_vm5 = vcmp.eq.f32.partialorder %v1230_v26, 8.507059e+37  ;;  %v838_v26 = vadd.f32 %v1997_v40, %v2007_v6 }
 0x1b9   : > { %v1183_v43 = vadd.f32 %v1154_v4, %v1111_v42  ;;  %v893_v42 = vadd.f32 %v1999_v41, %v830_v46  ;;  %v952_v4 = vpop.f32.mrf.mxu0 }
 0x1bb   : > { %v1552_v32 = vpop.eup %1551  ;;  %v1509_v49 = vmul.f32 -1.442695, %v1183_v43 }
 0x1bc   : > { %v1554_v50 = vpop.eup %1553  ;;  %v2011_v52 = vadd.f32 1.0, %v1552_v32  ;;  %v1013_v32 = vadd.f32 %v1012_v11, %v948_v18 }
 0x1bd   : > { %v1222_v53 = vmul.f32 %v1554_v50, %v1213_v27  ;;  %1555 = vpow2.f32 %v1509_v49  ;;  %vm1227_vm2 = vweird.f32 %v1554_v50 }
 0x1be   : > { %1557 = vrcp.f32 %v2011_v52  ;;  %v1067_v55 = vpop.f32.mrf.mxu2  ;;  %v1114_v56 = vpop.f32.mrf.mxu3  ;;  %vm1228_vm4 = vmor %vm1226_vm3, %vm1227_vm2  ;;  %v1247_v19 = vand.u32 2147483648, %v2011_v52  ;;  %v1245_v37 = vand.u32 2147483647, %v2011_v52  ;;  %vm1241_vm7 = vweird.f32 %v2011_v52 }
 0x1bf   : > { %v1223_v57 = vsub.f32 1.0, %v1222_v53  ;;  %v1115_v58 = vadd.f32 %v1114_v56, %v1064_v54  ;;  %v1068_v31 = vadd.f32 %v1067_v55, %v1007_v9  ;;  %v953_v54 = vadd.f32 %v952_v4, %v893_v42 }
 0x1c0   : > { %v1248_v47 = vor.u32 1.1754944e-38, %v1247_v19  ;;  %vm1246_vm9 = vcmp.eq.f32.partialorder %v1245_v37, 8.507059e+37 }
 0x1c1   : > { %v1224_v63 = vmul.f32 %v1554_v50, %v1223_v57  ;;  %v1184_v1 = vadd.f32 %v1159_v61, %v1115_v58 }
 0x1c3   : > { %v1556_v2 = vpop.eup %1555  ;;  %v1225_v5 = vadd.f32 %v1554_v50, %v1224_v63  ;;  %v1510_v7 = vmul.f32 -1.442695, %v1184_v1  ;;  %v1343_v63 = vsub.f32 %v1722_v24, %v1725_v25 }
 0x1c4   : > { %v1558_v8 = vpop.eup %1557  ;;  %v2019_v44 = vadd.f32 1.0, %v1556_v2 }
 0x1c5   : > { %v1229_v13 = vsel %vm1228_vm4, %v1554_v50, %v1225_v5  ;;  %v1237_v15 = vmul.f32 %v1558_v8, %v2011_v52  ;;  %1559 = vpow2.f32 %v1510_v7  ;;  %vm1242_vm6 = vweird.f32 %v1558_v8  ;;  %v1018_v52 = vpop.f32.mrf.mxu1 }
 0x1c6   : > { %v1234_v16 = vsel %vm1231_vm5, %v1233_v21, %v1229_v13  ;;  %1561 = vrcp.f32 %v2019_v44  ;;  %v1118_v17 = vpop.f32.mrf.mxu3  ;;  %v1071_v12 = vpop.f32.mrf.mxu2  ;;  %vm1243_vm8 = vmor %vm1241_vm7, %vm1242_vm6  ;;  %v1262_v57 = vand.u32 2147483648, %v2019_v44  ;;  %v1260_v61 = vand.u32 2147483647, %v2019_v44 }
 0x1c7   : > { %v1349_v34 = vmul.f32 %v1341_v3, %v1234_v16  ;;  %v1238_v60 = vsub.f32 1.0, %v1237_v15  ;;  %v1119_v27 = vadd.f32 %v1118_v17, %v1068_v31  ;;  %v1072_v41 = vadd.f32 %v1071_v12, %v1013_v32  ;;  %v957_v21 = vpop.f32.mrf.mxu0  ;;  %v1174_v17 = vpop.permute.xlu1 %1173 }
 0x1c8   : > { %v1019_v2 = vadd.f32 %v1018_v52, %v953_v54  ;;  %vm1256_vm11 = vweird.f32 %v2019_v44  ;;  %vm1261_vm13 = vcmp.eq.f32.partialorder %v1260_v61, 8.507059e+37 }
 0x1c9   : > { %v1357_v22 = vadd.f32 %v1349_v34, %v1752_v36  ;;  %v1239_v35 = vmul.f32 %v1558_v8, %v1238_v60  ;;  %v1185_v0 = vadd.f32 %v1164_v38, %v1119_v27  ;;  %v1581_v27 = vld [vmem:[%s1692_s14 + $0x18] sm:$0xff] }
 0x1cb   : > { %v1560_v39 = vpop.eup %1559  ;;  %v1365_v36 = vmul.f32 2.0, %v1357_v22  ;;  %v1240_v43 = vadd.f32 %v1558_v8, %v1239_v35  ;;  %v1511_v49 = vmul.f32 -1.442695, %v1185_v0  ;;  %v1344_v22 = vsub.f32 %v1581_v27, %v1719_v23  ;;  %v1588_v27 = vld [vmem:[%s1698_s17 + $0x30] sm:$0xff] }
 0x1cc   : > { %v1562_v20 = vpop.eup %1561  ;;  %v2038_v48 = vadd.f32 1.0, %v1560_v39 }
 0x1cd   : > { %1373 = vst.msk [vmem:[%s2032_s23] sm:$0xff] %vm399_vm0, %v1365_v36  ;;  %v1244_v50 = vsel %vm1243_vm8, %v1558_v8, %v1240_v43  ;;  %v1252_v29 = vmul.f32 %v1562_v20, %v2019_v44  ;;  %vm1257_vm10 = vweird.f32 %v1562_v20  ;;  %v1263_v8 = vor.u32 1.1754944e-38, %v1262_v57  ;;  %v1024_v60 = vpop.f32.mrf.mxu1 }
 0x1ce   : > { %v1249_v14 = vsel %vm1246_vm9, %v1248_v47, %v1244_v50  ;;  %1563 = vrcp.f32 %v2038_v48  ;;  %v1122_v53 = vpop.f32.mrf.mxu3  ;;  %v1075_v62 = vpop.f32.mrf.mxu2  ;;  %vm1258_vm12 = vmor %vm1256_vm11, %vm1257_vm10  ;;  %v1275_v46 = vand.u32 2147483647, %v2038_v48  ;;  %v1277_v34 = vand.u32 2147483648, %v2038_v48  ;;  %v1582_v50 = vld [vmem:[%s1698_s17 + $0x18] sm:$0xff] }
 0x1cf   : > { %v1350_v55 = vmul.f32 %v1342_v33, %v1249_v14  ;;  %v1253_v56 = vsub.f32 1.0, %v1252_v29  ;;  %1565 = vpow2.f32 %v1511_v49  ;;  %v1123_v58 = vadd.f32 %v1122_v53, %v1072_v41  ;;  %v1179_v49 = vpop.permute.xlu2 %1178 }
 0x1d0   : > { %v1076_v6 = vadd.f32 %v1075_v62, %v1019_v2  ;;  %vm1271_vm15 = vweird.f32 %v2038_v48  ;;  %v1278_v42 = vor.u32 1.1754944e-38, %v1277_v34  ;;  %vm1276_vm2 = vcmp.eq.f32.partialorder %v1275_v46, 8.507059e+37 }
 0x1d1   : > { %v1358_v28 = vadd.f32 %v1350_v55, %v1736_v30  ;;  %v1254_v51 = vmul.f32 %v1562_v20, %v1253_v56  ;;  %v1186_v1 = vadd.f32 %v1169_v59, %v1123_v58  ;;  %v897_v30 = vadd.f32 %v2003_v45, %v838_v26 }
 0x1d3   : > { %v1366_v3 = vmul.f32 2.0, %v1358_v28  ;;  %v1255_v5 = vadd.f32 %v1562_v20, %v1254_v51  ;;  %v1512_v9 = vmul.f32 -1.442695, %v1186_v1  ;;  %v958_v31 = vadd.f32 %v957_v21, %v897_v30  ;;  %v1583_v28 = vld [vmem:[%s1692_s14 + $0x20] sm:$0xff]  ;;  %v1585_v21 = vld [vmem:[%s1692_s14 + $0x28] sm:$0xff] }
 0x1d4   : > { %v1564_v7 = vpop.eup %1563  ;;  %v1584_v51 = vld [vmem:[%s1698_s17 + $0x20] sm:$0xff] }
 0x1d5   : > { %v1566_v10 = vpop.eup %1565  ;;  %1374 = vst.msk [vmem:[%s2032_s23 + $0x8] sm:$0xff] %vm399_vm0, %v1366_v3  ;;  %v1259_v24 = vsel %vm1258_vm12, %v1562_v20, %v1255_v5  ;;  %v1267_v40 = vmul.f32 %v1564_v7, %v2038_v48  ;;  %1567 = vpow2.f32 %v1512_v9  ;;  %vm1272_vm14 = vweird.f32 %v1564_v7 }
 0x1d6   : > { %v1264_v11 = vsel %vm1261_vm13, %v1263_v8, %v1259_v24  ;;  %v2056_v13 = vadd.f32 1.0, %v1566_v10  ;;  %v1126_v44 = vpop.f32.mrf.mxu3  ;;  %v1079_v38 = vpop.f32.mrf.mxu2  ;;  %v1025_v39 = vadd.f32 %v1024_v60, %v958_v31  ;;  %vm1273_vm1 = vmor %vm1271_vm15, %vm1272_vm14  ;;  %v1345_v61 = vsub.f32 %v1583_v28, %v1584_v51  ;;  %v1586_v24 = vld [vmem:[%s1698_s17 + $0x28] sm:$0xff] }
 0x1d7   : > { %v1351_v15 = vmul.f32 %v1343_v63, %v1264_v11  ;;  %v1268_v45 = vsub.f32 1.0, %v1267_v40  ;;  %v1127_v16 = vadd.f32 %v1126_v44, %v1076_v6  ;;  %v1346_v40 = vsub.f32 %v1585_v21, %v1586_v24 }
 0x1d8   : > { %1569 = vrcp.f32 %v2056_v13  ;;  %v1080_v23 = vadd.f32 %v1079_v38, %v1025_v39  ;;  %v1292_v41 = vand.u32 2147483648, %v2056_v13  ;;  %v1290_v56 = vand.u32 2147483647, %v2056_v13 }
 0x1d9   : > { %v1359_v12 = vadd.f32 %v1351_v15, %v1725_v25  ;;  %v1269_v18 = vmul.f32 %v1564_v7, %v1268_v45  ;;  %v1187_v19 = vadd.f32 %v1174_v17, %v1127_v16  ;;  %vm1286_vm4 = vweird.f32 %v2056_v13 }
 0x1da   : > { %v1293_v63 = vor.u32 1.1754944e-38, %v1292_v41  ;;  %vm1291_vm6 = vcmp.eq.f32.partialorder %v1290_v56, 8.507059e+37 }
 0x1db   : > { %v1367_v35 = vmul.f32 2.0, %v1359_v12  ;;  %v1270_v37 = vadd.f32 %v1564_v7, %v1269_v18  ;;  %v1513_v33 = vmul.f32 -1.442695, %v1187_v19  ;;  %v1568_v0 = vpop.eup %1567  ;;  %v1587_v19 = vld [vmem:[%s1692_s14 + $0x30] sm:$0xff] }
 0x1dc   : > { %v1218_v4 = vadd.f32 1.0, %v1568_v0 }
 0x1dd   : > { %1375 = vst.msk [vmem:[%s2032_s23 + $0x10] sm:$0xff] %vm399_vm0, %v1367_v35  ;;  %v1274_v25 = vsel %vm1273_vm1, %v1564_v7, %v1270_v37  ;;  %1571 = vpow2.f32 %v1513_v33 }
 0x1de   : > { %v1570_v36 = vpop.eup %1569  ;;  %v1279_v43 = vsel %vm1276_vm2, %v1278_v42, %v1274_v25  ;;  %v1130_v20 = vpop.f32.mrf.mxu3  ;;  %1573 = vrcp.f32 %v1218_v4  ;;  %v1307_v7 = vand.u32 2147483648, %v1218_v4  ;;  %v1305_v8 = vand.u32 2147483647, %v1218_v4 }
 0x1df   : > { %v1352_v32 = vmul.f32 %v1344_v22, %v1279_v43  ;;  %v1282_v47 = vmul.f32 %v1570_v36, %v2056_v13  ;;  %v1131_v48 = vadd.f32 %v1130_v20, %v1080_v23  ;;  %vm1287_vm3 = vweird.f32 %v1570_v36 }
 0x1e0   : > { %vm1288_vm5 = vmor %vm1286_vm4, %vm1287_vm3  ;;  %vm1301_vm8 = vweird.f32 %v1218_v4  ;;  %v1308_v44 = vor.u32 1.1754944e-38, %v1307_v7  ;;  %vm1306_vm10 = vcmp.eq.f32.partialorder %v1305_v8, 8.507059e+37  ;;  %v1347_v22 = vsub.f32 %v1587_v19, %v1588_v27 }
 0x1e1   : > { %v1360_v29 = vadd.f32 %v1582_v50, %v1352_v32  ;;  %v1283_v14 = vsub.f32 1.0, %v1282_v47  ;;  %v1188_v53 = vadd.f32 %v1179_v49, %v1131_v48  ;;  %v1589_v47 = vld [vmem:[%s1692_s14 + $0x38] sm:$0xff] }
 0x1e2   : > { %v1590_v48 = vld [vmem:[%s1698_s17 + $0x38] sm:$0xff] }
 0x1e3   : > { %v1572_v54 = vpop.eup %1571  ;;  %v1368_v52 = vmul.f32 2.0, %v1360_v29  ;;  %v1284_v55 = vmul.f32 %v1570_v36, %v1283_v14  ;;  %v1514_v58 = vmul.f32 -1.442695, %v1188_v53  ;;  %v1348_v49 = vsub.f32 %v1589_v47, %v1590_v48 }
 0x1e4   : > { %v1219_v57 = vadd.f32 1.0, %v1572_v54  ;;  %v1574_v59 = vpop.eup %1573 }
 0x1e5   : > { %1376 = vst.msk [vmem:[%s2032_s23 + $0x18] sm:$0xff] %vm399_vm0, %v1368_v52  ;;  %v1285_v62 = vadd.f32 %v1570_v36, %v1284_v55  ;;  %v1297_v26 = vmul.f32 %v1574_v59, %v1218_v4  ;;  %vm1302_vm7 = vweird.f32 %v1574_v59 }
 0x1e6   : > { %1575 = vrcp.f32 %v1219_v57  ;;  %vm1303_vm9 = vmor %vm1301_vm8, %vm1302_vm7  ;;  %v1322_v34 = vand.u32 2147483648, %v1219_v57  ;;  %v1320_v12 = vand.u32 2147483647, %v1219_v57  ;;  %vm1316_vm12 = vweird.f32 %v1219_v57 }
 0x1e7   : > { %v1289_v1 = vsel %vm1288_vm5, %v1570_v36, %v1285_v62  ;;  %1577 = vpow2.f32 %v1514_v58  ;;  %v1298_v3 = vsub.f32 1.0, %v1297_v26 }
 0x1e8   : > { %v1294_v2 = vsel %vm1291_vm6, %v1293_v63, %v1289_v1  ;;  %v1323_v38 = vor.u32 1.1754944e-38, %v1322_v34  ;;  %vm1321_vm14 = vcmp.eq.f32.partialorder %v1320_v12, 8.507059e+37 }
 0x1e9   : > { %v1353_v5 = vmul.f32 %v1345_v61, %v1294_v2  ;;  %v1299_v30 = vmul.f32 %v1574_v59, %v1298_v3 }
 0x1eb   : > { %v1361_v9 = vadd.f32 %v1584_v51, %v1353_v5  ;;  %v1300_v6 = vadd.f32 %v1574_v59, %v1299_v30 }
 0x1ec   : > { %v1576_v10 = vpop.eup %1575 }
 0x1ed   : > { %v1578_v11 = vpop.eup %1577  ;;  %v1369_v13 = vmul.f32 2.0, %v1361_v9  ;;  %v1312_v15 = vmul.f32 %v1576_v10, %v1219_v57  ;;  %v1304_v45 = vsel %vm1303_vm9, %v1574_v59, %v1300_v6  ;;  %vm1317_vm11 = vweird.f32 %v1576_v10 }
 0x1ee   : > { %v1220_v16 = vadd.f32 1.0, %v1578_v11  ;;  %v1309_v31 = vsel %vm1306_vm10, %v1308_v44, %v1304_v45  ;;  %vm1318_vm13 = vmor %vm1316_vm12, %vm1317_vm11 }
 0x1ef   : > { %1377 = vst.msk [vmem:[%s2032_s23 + $0x20] sm:$0xff] %vm399_vm0, %v1369_v13  ;;  %v1313_v17 = vsub.f32 1.0, %v1312_v15  ;;  %v1354_v46 = vmul.f32 %v1346_v40, %v1309_v31 }
 0x1f0   : > { %1579 = vrcp.f32 %v1220_v16  ;;  %v1337_v43 = vand.u32 2147483648, %v1220_v16  ;;  %v1335_v32 = vand.u32 2147483647, %v1220_v16  ;;  %vm1331_vm1 = vweird.f32 %v1220_v16 }
 0x1f1   : > { %v1314_v60 = vmul.f32 %v1576_v10, %v1313_v17  ;;  %v1362_v18 = vadd.f32 %v1586_v24, %v1354_v46 }
 0x1f2   : > { %v1338_v29 = vor.u32 1.1754944e-38, %v1337_v43  ;;  %vm1336_vm3 = vcmp.eq.f32.partialorder %v1335_v32, 8.507059e+37 }
 0x1f3   : > { %v1315_v35 = vadd.f32 %v1576_v10, %v1314_v60  ;;  %v1370_v37 = vmul.f32 2.0, %v1362_v18 }
 0x1f5   : > { %v1319_v33 = vsel %vm1318_vm13, %v1576_v10, %v1315_v35  ;;  %1378 = vst.msk [vmem:[%s2032_s23 + $0x28] sm:$0xff] %vm399_vm0, %v1370_v37 }
 0x1f6   : > { %v1580_v0 = vpop.eup %1579  ;;  %v1324_v39 = vsel %vm1321_vm14, %v1323_v38, %v1319_v33 }
 0x1f7   : > { %v1355_v42 = vmul.f32 %v1347_v22, %v1324_v39  ;;  %v1327_v25 = vmul.f32 %v1580_v0, %v1220_v16  ;;  %vm1332_vm15 = vweird.f32 %v1580_v0 }
 0x1f8   : > { %vm1333_vm2 = vmor %vm1331_vm1, %vm1332_vm15 }
 0x1f9   : > { %v1363_v4 = vadd.f32 %v1588_v27, %v1355_v42  ;;  %v1328_v36 = vsub.f32 1.0, %v1327_v25 }
 0x1fb   : > { %v1371_v23 = vmul.f32 2.0, %v1363_v4  ;;  %v1329_v20 = vmul.f32 %v1580_v0, %v1328_v36 }
 0x1fd   : > { %1379 = vst.msk [vmem:[%s2032_s23 + $0x30] sm:$0xff] %vm399_vm0, %v1371_v23  ;;  %v1330_v50 = vadd.f32 %v1580_v0, %v1329_v20 }
 0x1ff   : > { %v1334_v14 = vsel %vm1333_vm2, %v1580_v0, %v1330_v50 }
 0x200   : > { %v1339_v41 = vsel %vm1336_vm3, %v1338_v29, %v1334_v14 }
 0x201   : > { %v1356_v53 = vmul.f32 %v1348_v49, %v1339_v41 }
 0x203   : > { %v1364_v54 = vadd.f32 %v1590_v48, %v1356_v53 }
 0x205   : > { %v1372_v52 = vmul.f32 2.0, %v1364_v54 }
 0x207   : > { %1380 = vst.msk [vmem:[%s2032_s23 + $0x38] sm:$0xff] %vm399_vm0, %v1372_v52 }
 0x208 PF: > { %s17_s26 = sadd.s32 1, %s1613_s26   ;;  %s2107_s24 = smov %s1609_s25 }
 0x209   : > { %p14_p5 = scmp.ge.s32.totalorder %s17_s26, 4   ;;  %s2108_s25 = smov %s2110_s27 }
 0x20b   :  { %16 = sbr.rel (!%p14_p5) target bundleno = 2 (0x2), region = 84 }

</bundles_post_ra>
